<compile_context>
chip_gen: v7x
topology: tpu7x:2x2x1
jax: 0.10.0
libtpu: 0.0.40
codegen_flags: <defaults>
</compile_context>

<pallas_src>
import functools

import jax
import jax.numpy as jnp
import numpy as np
from jax.experimental import pallas as pl
from jax.experimental.pallas import tpu as pltpu

LEAKY_SLOPE = 0.01    # F.leaky_relu default negative slope
SCATTER_EPS = 1e-16   # torch_geometric softmax epsilon
_LANE = 128
_SUBLANE_F32 = 8
_B_TILE_CAP = 256     # multiple of 8; keeps the flat tile lane-wide even for huge B


def _cdiv(a, b):
    return -(-a // b)


def _batch_sum_kernel(t_ref, o_ref, *, b_total, b_tile, n_b_steps, mask_batch):
    """Reduce a (b_tile, f_tile) slab of t (viewed as (B, N*De)) over the batch axis.

    Grid = (flat tiles ["parallel"], batch tiles ["arbitrary", last]); the output
    block index ignores the batch axis, so o_ref is a resident f32 accumulator.
    """
    x = t_ref[...].astype(jnp.float32)
    if mask_batch:
        # Ragged batch tiles: padding rows on the *reduced* axis would corrupt
        # the sum, so zero them before reducing.
        row = jax.lax.broadcasted_iota(jnp.int32, x.shape, 0) + pl.program_id(1) * b_tile
        x = jnp.where(row < b_total, x, 0.0)
    psum = jnp.sum(x, axis=0, keepdims=True)
    if n_b_steps == 1:
        o_ref[...] = psum
    else:
        @pl.when(pl.program_id(1) == 0)
        def _():
            o_ref[...] = jnp.zeros_like(o_ref)
        o_ref[...] += psum


def _vmem_plan():
    """Generation-aware (block budget, vmem_limit_bytes, min flat-axis steps)."""
    try:
        cap = int(pltpu.get_tpu_info().vmem_capacity_bytes)
    except Exception:
        cap = 0
    if cap <= 0:
        cap = 64 << 20            # conservative fallback: v7x-sized VMEM
    cap = min(cap, 128 << 20)     # never assume more than v5e/v6e physical VMEM
    block_budget = (3 * cap) // 8  # 48 MiB on v5e/v6e, 24 MiB on v7x
    vmem_limit = (3 * cap) // 4    # 96 MiB on v5e/v6e, 48 MiB on v7x
    # v7x (64 MiB VMEM) has 2 TensorCores sharing the "parallel" axis: give each work.
    min_f_steps = 2 if cap <= (64 << 20) else 1
    return block_budget, vmem_limit, min_f_steps


def _pick_f_tile(flat, b_tile, itemsize, budget_bytes, min_f_steps):
    """Largest 128-aligned flat tile whose padded, double-buffered footprint fits."""
    sub_in = max(_SUBLANE_F32, 32 // itemsize)        # layout tile rows: 8 f32 / 16 bf16 / 32 i8
    rows_in = _cdiv(b_tile, sub_in) * sub_in          # (b_tile, f) input block pads to this
    rows_out = _SUBLANE_F32                           # (1, f) f32 output block pads to 8 rows
    per_col = 2 * (rows_in * itemsize + rows_out * 4)  # double-buffered input + output blocks
    per_col += rows_in * 4                             # headroom: in-kernel f32 cast of one block
    f = max(_LANE, (budget_bytes // per_col) // _LANE * _LANE)
    if min_f_steps >= 2 and flat > _LANE:
        # Split so at least two "parallel" steps exist (feeds both v7x TCs).
        half = _cdiv(_cdiv(flat, 2), _LANE) * _LANE
        f = min(f, half)
    return flat if flat <= f else f


def batch_graph_encoder(h, r, t, w_i=None, w_j=None, w_k=None, *,
                        f_tile=None, b_tile=None, return_parts=False,
                        vmem_budget_bytes=None, vmem_limit_bytes=None):
    """Forward pass of BatchGraphEncoder.

    w_i/w_j/w_k are accepted for API parity with the PyTorch module but are dead
    for finite inputs (singleton scatter-softmax groups => alpha == 1.0 in f32).
    t may be bf16 (halves the dominant HBM read); accumulation is always f32.
    return_parts=True returns (hr_sum, t_sum) and skips the (N, 2*De+Dr)
    broadcast+concat materialization, which dominates HBM traffic when B is small.
    """
    B, De = h.shape
    Dr = r.shape[-1]
    Bt, N, De_t = t.shape
    assert Bt == B and De_t == De, "h/t batch and entity dims must match"

    flat = N * De
    t_flat = t.reshape(B, flat)                       # contiguous view, no copy
    itemsize = np.dtype(t.dtype).itemsize

    budget, limit, min_f_steps = _vmem_plan()
    if vmem_budget_bytes is not None:
        budget = int(vmem_budget_bytes)
    if vmem_limit_bytes is not None:
        limit = int(vmem_limit_bytes)

    # --- batch tiling (keeps the flat tile lane-wide for large B) -------------
    if b_tile is None:
        b_tile = B if B <= _B_TILE_CAP else _B_TILE_CAP
    else:
        b_tile = min(int(b_tile), B)
        if b_tile != B:                               # partial batch tiles: sublane-aligned
            b_tile = max(_SUBLANE_F32, (b_tile // _SUBLANE_F32) * _SUBLANE_F32)
    n_b = _cdiv(B, b_tile)
    mask_batch = (n_b * b_tile) != B                  # any padding on the reduced axis?

    # --- flat-axis tiling (lane-dense (B, N*De) view) -------------------------
    if f_tile is None:
        f_tile = _pick_f_tile(flat, b_tile, itemsize, budget, min_f_steps)
    else:
        f_tile = min(int(f_tile), flat)
        if f_tile != flat:                            # partial flat tiles: lane-aligned
            f_tile = max(_LANE, (f_tile // _LANE) * _LANE)
    n_f = _cdiv(flat, f_tile)                         # ceil-div: ragged last tile masked on store

    kernel = functools.partial(_batch_sum_kernel, b_total=B, b_tile=b_tile,
                               n_b_steps=n_b, mask_batch=mask_batch)

    t_sum_flat = pl.pallas_call(
        kernel,
        out_shape=jax.ShapeDtypeStruct((1, flat), jnp.float32),
        grid=(n_f, n_b),
        in_specs=[pl.BlockSpec((b_tile, f_tile), lambda i, j: (j, i))],
        out_specs=pl.BlockSpec((1, f_tile), lambda i, j: (0, i)),
        compiler_params=pltpu.CompilerParams(
            dimension_semantics=("parallel", "arbitrary"),   # flat tiles shard across TCs
            vmem_limit_bytes=limit),
    )(t_flat)

    t_sum = t_sum_flat.reshape(N, De)
    hr_sum = jnp.concatenate([jnp.sum(h.astype(jnp.float32), axis=0),
                              jnp.sum(r.astype(jnp.float32), axis=0)])    # (De+Dr,)
    if return_parts:
        return hr_sum, t_sum                           # consumer broadcasts/concats lazily
    hr_part = jnp.broadcast_to(hr_sum[None, :], (N, De + Dr))
    return jnp.concatenate([hr_part, t_sum], axis=-1)  # (N, 2*De+Dr)


def reference(h, r, t, w_i, w_j, w_k):
    """Faithful pure-JAX reproduction of the PyTorch forward (full attention path)."""
    e_i = h @ w_i                                                   # (B, 1)
    r_k = r @ w_k                                                   # (B, 1)
    e_j = jnp.einsum('bnd,dk->bnk', t, w_j)[..., 0]                 # (B, N)
    a = e_i + e_j + r_k
    x = jnp.where(a > 0, a, LEAKY_SLOPE * a)                        # leaky_relu
    ex = jnp.exp(x - x)                                             # singleton scatter softmax
    alpha = ex / (ex + SCATTER_EPS)                                 # == 1.0 in f32
    B, N, De = t.shape
    h_rep = jnp.broadcast_to(h[:, None, :], (B, N, De))
    r_rep = jnp.broadcast_to(r[:, None, :], (B, N, r.shape[-1]))
    v = jnp.concatenate([h_rep, r_rep, t], axis=-1)                 # (B, N, 2*De+Dr)
    return jnp.einsum('bn,bno->no', alpha, v)                       # (N, 2*De+Dr)


def _make_inputs(key, B, N, De, Dr):
    k1, k2, k3, k4, k5, k6 = jax.random.split(key, 6)
    h = jax.random.normal(k1, (B, De), jnp.float32)
    r = jax.random.normal(k2, (B, Dr), jnp.float32)
    t = jax.random.normal(k3, (B, N, De), jnp.float32)
    # nn.Linear(d, 1, bias=False) weights stored transposed as (d, 1):
    w_i = 0.1 * jax.random.normal(k4, (De, 1), jnp.float32)
    w_j = 0.1 * jax.random.normal(k5, (De, 1), jnp.float32)
    w_k = 0.1 * jax.random.normal(k6, (Dr, 1), jnp.float32)
    return h, r, t, w_i, w_j, w_k


if __name__ == "__main__":
    key = jax.random.PRNGKey(0)
    k_a, k_b, k_c = jax.random.split(key, 3)

    # Case 1: B=2, N=16, De=Dr=32 (flat=512). Force f_tile=128 -> 4 "parallel" steps.
    h, r, t, w_i, w_j, w_k = _make_inputs(k_a, B=2, N=16, De=32, Dr=32)
    ref = reference(h, r, t, w_i, w_j, w_k)
    out = jax.block_until_ready(
        batch_graph_encoder(h, r, t, w_i, w_j, w_k, f_tile=128))
    np.testing.assert_allclose(np.asarray(out), np.asarray(ref), rtol=1e-5, atol=1e-5)
    assert out.shape == (16, 2 * 32 + 32)

    # Case 2: ragged flat axis (N=10, De=24, Dr=8 -> flat=240, f_tile=128 -> masked boundary).
    h2, r2, t2, wi2, wj2, wk2 = _make_inputs(k_b, B=2, N=10, De=24, Dr=8)
    out2 = jax.block_until_ready(
        batch_graph_encoder(h2, r2, t2, wi2, wj2, wk2, f_tile=128))
    np.testing.assert_allclose(np.asarray(out2),
                               np.asarray(reference(h2, r2, t2, wi2, wj2, wk2)),
                               rtol=1e-5, atol=1e-5)

    # Case 3: generation-aware defaults (auto VMEM budget, >=2 flat steps on v7x).
    out3 = jax.block_until_ready(batch_graph_encoder(h, r, t, w_i, w_j, w_k))
    np.testing.assert_allclose(np.asarray(out3), np.asarray(ref), rtol=1e-5, atol=1e-5)

    # Case 4: large batch -> batch-tiled accumulator with a masked ragged batch tile
    # (B=300 > _B_TILE_CAP=256 -> grid (1, 2), second batch step masked).
    h4, r4, t4, wi4, wj4, wk4 = _make_inputs(k_c, B=300, N=8, De=16, Dr=8)
    out4 = jax.block_until_ready(batch_graph_encoder(h4, r4, t4, wi4, wj4, wk4))
    np.testing.assert_allclose(np.asarray(out4),
                               np.asarray(reference(h4, r4, t4, wi4, wj4, wk4)),
                               rtol=1e-4, atol=1e-4)

    # Case 5: return_parts path (no epilogue materialization) recombined by the consumer.
    hr_sum, t_sum = batch_graph_encoder(h, r, t, w_i, w_j, w_k, return_parts=True)
    full = jnp.concatenate(
        [jnp.broadcast_to(hr_sum[None, :], (t.shape[1], hr_sum.shape[0])), t_sum], axis=-1)
    np.testing.assert_allclose(np.asarray(jax.block_until_ready(full)),
                               np.asarray(ref), rtol=1e-5, atol=1e-5)

    # Case 6: bf16 t ingested natively (f32 accumulation inside the kernel).
    t_bf = t.astype(jnp.bfloat16)
    out_bf = jax.block_until_ready(batch_graph_encoder(h, r, t_bf, w_i, w_j, w_k))
    ref_bf = reference(h, r, t_bf.astype(jnp.float32), w_i, w_j, w_k)
    np.testing.assert_allclose(np.asarray(out_bf), np.asarray(ref_bf), rtol=1e-5, atol=1e-5)

    print("KERNEL_OK")
</pallas_src>

<mosaic_0001>
module attributes {stable_mosaic.version = 11 : i64} {
  func.func @_batch_sum_kernel(%arg0: i32, %arg1: i32, %arg2: memref<2x128xf32, #tpu.memory_space<vmem>>, %arg3: memref<1x128xf32, #tpu.memory_space<vmem>>) attributes {dimension_semantics = [#tpu.dimension_semantics<parallel>, #tpu.dimension_semantics<arbitrary>], iteration_bounds = array<i64: 4, 1>, scalar_prefetch = 0 : i64, scratch_operands = 0 : i64, tpu.core_type = #tpu.core_type<tc>, window_params = [{transform_indices = @transform_0, window_bounds = array<i64: 2, 128>}, {transform_indices = @transform_1, window_bounds = array<i64: 1, 128>}]} {
    %c0 = arith.constant 0 : index
    %c0_0 = arith.constant 0 : index
    %0 = vector.load %arg2[%c0, %c0_0] : memref<2x128xf32, #tpu.memory_space<vmem>>, vector<2x128xf32>
    %cst = arith.constant dense<0.000000e+00> : vector<128xf32>
    %1 = vector.multi_reduction <add>, %0, %cst [0] : vector<2x128xf32> to vector<128xf32>
    %2 = vector.shape_cast %1 : vector<128xf32> to vector<1x128xf32>
    %c0_1 = arith.constant 0 : index
    %c0_2 = arith.constant 0 : index
    %3 = vector.load %arg3[%c0_1, %c0_2] : memref<1x128xf32, #tpu.memory_space<vmem>>, vector<1x128xf32>
    tpu.vector_store %arg3[%c0_1, %c0_2], %2 {strides = array<i32>} : memref<1x128xf32, #tpu.memory_space<vmem>>, vector<1x128xf32>,
    return
  }
  func.func @transform_0(%arg0: i32, %arg1: i32) -> (i32, i32) {
    %c0_i32 = arith.constant 0 : i32
    return %arg1, %arg0 : i32, i32
  }
  func.func @transform_1(%arg0: i32, %arg1: i32) -> (i32, i32) {
    %c0_i32 = arith.constant 0 : i32
    %c0_i32_0 = arith.constant 0 : i32
    return %c0_i32, %arg0 : i32, i32
  }
}

</mosaic_0001>

<bundles_post_ra>
// kernel: tpu_custom_call.1
= control target key start
LH: loop header
LB: loop body
LE: loop exit
PB: predicated region body
PF: predicated region fallthrough
CT: control target
= control target key end

     0   :  { %6 = vsyncpa [#allocation3], 0  ;;  %s613_s0 = inlined_call_operand.hbm [shape: f32[2,512], index: 0, kind: input, shape index: {}]   ;;  %s614_s1 = inlined_call_operand.hbm [shape: f32[1,512], index: 1, kind: output, shape index: {}]  }
   0x1   :  { %8 = vsyncpa [#allocation3 + $0x1], 0 }
   0x2   :  { %9 = vsyncpa [#allocation4], 0 }
   0x3   :  { %11 = vsyncpa [#allocation4 + $0x1], 0  ;;  %s442_s6 = smov 0   ;;  %s444_s7 = smov 0  }
   0x4   :  { %s446_s8 = smov 0   ;;  %s448_s9 = smov 0  }
   0x5   :  { %s450_s10 = smov 0   ;;  %s452_s11 = smov 0  }
   0x6 LB: > { %s243_s12 = sadd.s32 4294967295, %s428_s11   ;;  %s244_s13 = sadd.s32 4294967294, %s428_s11   ;;  %s428_s11 = sphi %s452_s11, %s17_s11   ;;  %s424_s10 = sphi %s450_s10, %s629_s10   ;;  %s420_s9 = sphi %s448_s9, %s628_s9   ;;  %s416_s8 = sphi %s446_s8, %s627_s8   ;;  %s412_s7 = sphi %s444_s7, %s626_s7   ;;  %s408_s6 = sphi %s442_s6, %s625_s6  }
   0x7   : > { %s29_s14 = sadd.s32 1, %s424_s10  ;;  %s38_s15 = sadd.s32 1, %s416_s8 }
   0x8   : > { %p31_p0 = scmp.ge.s32.totalorder %s29_s14, 4  ;;  %p45_p1 = scmp.ne.s32.totalorder %s416_s8, %s412_s7 }
   0x9   : > { %p46_p2 = scmp.eq.s32.totalorder %s428_s11, 0  ;;  %p51_p3 = scmp.ne.s32.totalorder %s412_s7, %s408_s6 }
   0xa   : > { %s631_s14 = smov (%p31_p0, %s29_s14), 0  ;;  %p52_p5 = scmp.eq.s32.totalorder %s243_s12, 0 }
   0xb   : > { %p483_p4 = por %p46_p2, %p45_p1  ;;  %s34_s17 = ssub.s32 %s424_s10, %s631_s14 }
   0xc   : > { %p75_p6 = scmp.eq.s32.totalorder %s243_s12, 3  ;;  %p36_p7 = scmp.eq.s32.totalorder %s34_s17, 0 }
   0xd   : > { %p489_p8 = por %p52_p5, %p51_p3  ;;  %p81_p10 = scmp.eq.s32.totalorder %s244_s13, 3 }
   0xe   : > { %p493_p9 = por %p75_p6, %p45_p1  ;;  %p266_p12 = scmp.lt.s32.totalorder %s428_s11, 4 }
   0xf   : > { %s498_s20 = scalar_select %p36_p7, %s416_s8, %s38_s15  }
  0x10   : > { %s618_s19 = scalar_select %p493_p9, 1, 0 }
  0x11   : > { %p500_p11 = por %p81_p10, %p51_p3  ;;  %s101_s22 = sand.u32 1, %s416_s8  }
  0x12   : > { %s247_s23 = sshll.u32 %s101_s22, 1  ;;  %s248_s24 = sshll.u32 %s424_s10, 5 }
  0x13   : > { %s619_s21 = scalar_select %p500_p11, 1, 0 }
  0x14   : > { %s510_s27 = scalar_lea.hbm %s613_s0, %s248_s24  ;;  %s105_s28 = scalar_lea.vmem [#allocation2], %s247_s23 }
  0x15   : > { %s114_s29 = sshll.u32 %s105_s28, 4  ;;  %p516_p13 = pnand %p266_p12, %p483_p4  ;;  %s512_s29 = int_to_ptr.vmem [resolvable:$true] %s114_s29 }
  0x16   : > { %s102_s2 = scalar_lea.sflag [#allocation3], %s101_s22  ;;  %s316_s3 = scalar_lea.hbm %s510_s27, 32 }
  0x17   : > { %p317_p2 = scmp.ne.s32.totalorder %s510_s27, %s316_s3  ;;  %p318_p3 = pneg %p516_p13 }
  0x18   : > { %s321_s12 = scalar_lea.hbm %s613_s0, 128  ;;  %p322_p4 = scmp.lt.u32.totalorder %s510_s27, %s613_s0 }
  0x19   : > { %p319_p5 = pnand %p318_p3, %p317_p2  ;;  %p323_p7 = scmp.lt.u32.totalorder %s321_s12, %s316_s3 }
  0x1a   : > { %p325_p12 = scmp.lt.u32.totalorder %s316_s3, %s510_s27 }
  0x1b   : > { %p320_p6 = pneg %p319_p5  ;;  %p324_p10 = por %p323_p7, %p322_p4 }
  0x1d   : > { %p326_p0 = por %p325_p12, %p324_p10 }
  0x1f   : > { %p327_p1 = pnand %p326_p0, %p320_p6 }
  0x21   : > { %330 = shalt.err (!%p327_p1)
}
  0x22   : > { %s331_s16 = scalar_lea.vmem %s512_s29, 32  ;;  %s430_s17 = smov [#allocation2]  }
  0x23   : > { %p332_p2 = scmp.ne.s32.totalorder %s512_s29, %s331_s16  ;;  %s336_s22 = sshll.u32 %s430_s17, 4  ;;  %s337_s22 = int_to_ptr.vmem [resolvable:$false] %s336_s22 }
  0x24   : > { %s338_s23 = scalar_lea.vmem %s337_s22, 64  ;;  %p339_p9 = scmp.lt.s32.totalorder %s512_s29, %s337_s22 }
  0x25   : > { %p334_p5 = pnand %p332_p2, %p318_p3  ;;  %p340_p4 = scmp.lt.s32.totalorder %s338_s23, %s331_s16 }
  0x27   : > { %p335_p11 = pneg %p334_p5  ;;  %p341_p7 = por %p340_p4, %p339_p9 }
  0x29   : > { %p342_p10 = pnand %p341_p7, %p335_p11 }
  0x2b   : > { %345 = shalt.err (!%p342_p10)
}
  0x2c   : > { %261 = dma.hbm_to_vmem [thread:$0]  (!%p516_p13), %s510_s27, 32, %s512_s29, %s102_s2  }
  0x2d   : > { %p621_p0 = scmp.lt.s32.totalorder %s428_s11, 5  ;;  %p622_p1 = scmp.ge.s32.totalorder %s428_s11, 1 }
  0x2f   : > { %p120_p3 = pnand %p622_p1, %p621_p0 }
  0x30   : > { %s552_s24 = sand.u32 (!%p120_p3), 1, %s412_s7  }
  0x31   : > { %123 = sbr.rel (%p120_p3) target bundleno = 85 (0x55), region = 24  ;;  %s250_s25 = sshll.u32 (!%p120_p3), %s552_s24, 1 }
  0x32   : > { %s126_s26 = scalar_lea.sflag (!%p120_p3), [#allocation3], %s552_s24  ;;  %s129_s28 = scalar_lea.vmem (!%p120_p3), [#allocation2], %s250_s25 }
  0x38   : > { %399 = dma.done.wait (%p489_p8), %s126_s26, 32  }
  0x39   : > { %401 = vsyncadd (%p489_p8), %s126_s26, 4294967264  ;;  %vm148_vm0 = vcmask 1041408   ;;  %v147_v0 = vld [vmem:[%s129_s28] sm:$0x3]  ;;  %s146_s27 = scalar_lea.vmem [#allocation5], %s552_s24  ;;  %s251_s30 = sshll.u32 %s420_s9, 4 }
  0x3a   : > { %v149_v1 = vsel %vm148_vm0, %v147_v0, 0.0  ;;  %s170_s29 = sshll.u32 %s146_s27, 4  ;;  %s567_s3 = scalar_lea.hbm %s614_s1, %s251_s30  ;;  %s562_s29 = int_to_ptr.vmem [resolvable:$true] %s170_s29 }
  0x3b   : > { %v150_v2 = vrot.slane %v149_v1, 4  ;;  %s158_s4 = scalar_lea.sflag [#allocation4], %s552_s24  ;;  %s346_s5 = scalar_lea.vmem %s562_s29, 16 }
  0x3c   : > { %p347_p8 = scmp.ne.s32.totalorder %s562_s29, %s346_s5  ;;  %p623_p9 = scmp.ne.s32.totalorder %s618_s19, 0 }
  0x3d   : > { %v151_v3 = vadd.f32 %v150_v2, %v149_v1  ;;  %s431_s9 = smov [#allocation5]  }
  0x3e   : > { %p348_p11 = pnand %p347_p8, %p623_p9  ;;  %s350_s12 = sshll.u32 %s431_s9, 4  ;;  %s351_s12 = int_to_ptr.vmem [resolvable:$false] %s350_s12 }
  0x3f   : > { %v152_v4 = vrot.slane %v151_v3, 2  ;;  %s352_s13 = scalar_lea.vmem %s351_s12, 32  ;;  %p353_p6 = scmp.lt.s32.totalorder %s562_s29, %s351_s12 }
  0x40   : > { %p349_p13 = pneg %p348_p11  ;;  %p354_p12 = scmp.lt.s32.totalorder %s352_s13, %s346_s5 }
  0x41   : > { %v153_v5 = vadd.f32 %v152_v4, %v151_v3 }
  0x42   : > { %p355_p2 = por %p354_p12, %p353_p6 }
  0x43   : > { %v154_v6 = vrot.slane %v153_v5, 1 }
  0x44   : > { %p356_p5 = pnand %p355_p2, %p349_p13 }
  0x45   : > { %v155_v7 = vadd.f32 %v154_v6, %v153_v5 }
  0x47   : > { %156 = vst [vmem:[%s146_s27] sm:$0x1] %v155_v7 }
  0x48   : > { %359 = shalt.err (!%p356_p5)
}
  0x49   : > { %s360_s15 = scalar_lea.hbm %s567_s3, 16  ;;  %s364_s22 = scalar_lea.hbm %s614_s1, 64 }
  0x4a   : > { %p361_p4 = scmp.ne.s32.totalorder %s567_s3, %s360_s15  ;;  %p365_p0 = scmp.lt.u32.totalorder %s567_s3, %s614_s1 }
  0x4b   : > { %p366_p1 = scmp.lt.u32.totalorder %s364_s22, %s360_s15  ;;  %p368_p8 = scmp.lt.u32.totalorder %s360_s15, %s567_s3 }
  0x4c   : > { %p362_p7 = pnand %p361_p4, %p623_p9 }
  0x4d   : > { %p367_p3 = por %p366_p1, %p365_p0 }
  0x4e   : > { %p363_p10 = pneg %p362_p7 }
  0x4f   : > { %p369_p11 = por %p368_p8, %p367_p3 }
  0x51   : > { %p370_p13 = pnand %p369_p11, %p363_p10 }
  0x53   : > { %373 = shalt.err (!%p370_p13)
}
  0x54   : > { %256 = dma.vmem_to_hbm [thread:$0]  (%p623_p9), %s562_s29, 16, %s567_s3, %s158_s4  }
  0x55 PF: > { %p267_p6 = scmp.ge.s32.totalorder %s428_s11, 2  ;;  %s182_s25 = sand.u32 1, %s408_s6  }
  0x56   : > { %p624_p12 = scmp.ne.s32.totalorder %s619_s21, 0  ;;  %s183_s26 = scalar_lea.sflag [#allocation4], %s182_s25 }
  0x58   : > { %p263_p2 = pnand %p267_p6, %p624_p12 }
  0x5a   : > { %403 = dma.done.wait (!%p263_p2), %s183_s26, 16  }
  0x5b   : > { %405 = vsyncadd (!%p263_p2), %s183_s26, 4294967280  ;;  %s17_s11 = sadd.s32 1, %s428_s11   ;;  %s625_s6 = smov %s412_s7 }
  0x5c   : > { %p14_p5 = scmp.ge.s32.totalorder %s17_s11, 6   ;;  %s626_s7 = smov %s416_s8 }
  0x5d   : > { %s627_s8 = smov %s498_s20  ;;  %s628_s9 = smov %s424_s10 }
  0x5e   : > { %s629_s10 = smov %s631_s14  ;;  %16 = sbr.rel (!%p14_p5) target bundleno = 6 (0x6), region = 69 }
  0x65   :  { %187 = vsyncpa [#allocation3], 1 }
  0x66   :  { %189 = vsyncpa [#allocation3 + $0x1], 1 }
  0x67   :  { %190 = vsyncpa [#allocation4], 1 }
  0x68   :  { %192 = vsyncpa [#allocation4 + $0x1], 1 }

</bundles_post_ra>
